<compile_context>
chip_gen: v6e
topology: v6e:2x2x1
jax: 0.10.0
libtpu: 0.0.40
codegen_flags: <defaults>
</compile_context>

<pallas_src>
import math

import jax
import jax.numpy as jnp
from jax.experimental import pallas as pl
from jax.experimental.pallas import tpu as pltpu


def _build_pos_table(seq_len: int, d_model: int) -> jnp.ndarray:
    """Sinusoidal positional table (seq_len, d_model); same math as PyTorch PositionalEmbedding."""
    assert d_model % 2 == 0, "d_model must be even (as the PyTorch module requires)"
    position = jnp.arange(seq_len, dtype=jnp.float32)[:, None]                 # (L, 1)
    div_term = jnp.exp(
        jnp.arange(0, d_model, 2, dtype=jnp.float32) * -(math.log(10000.0) / d_model)
    )                                                                          # (d/2,)
    ang = position * div_term                                                  # (L, d/2)
    pe = jnp.zeros((seq_len, d_model), jnp.float32)
    pe = pe.at[:, 0::2].set(jnp.sin(ang))
    pe = pe.at[:, 1::2].set(jnp.cos(ang))
    return pe


def _embed_kernel(x_ref, w_ref, pe_ref, o_ref):
    # x_ref : (TL, 3*c_in)  unfolded inputs for this (batch, seq-tile)
    # w_ref : (3*c_in, TD)  flattened conv weight slice (resident across the grid)
    # pe_ref: (TL, TD)      positional-embedding slice
    # o_ref : (TL, TD)
    y = jnp.dot(x_ref[...], w_ref[...], preferred_element_type=jnp.float32)
    o_ref[...] = (y + pe_ref[...]).astype(o_ref.dtype)


def _pick_tile(n: int, candidates) -> int:
    for c in candidates:
        if n >= c and n % c == 0:
            return c
    return n


def data_embedding_onlypos(x: jnp.ndarray, conv_weight: jnp.ndarray, x_mark=None) -> jnp.ndarray:
    """
    Forward of DataEmbedding_onlypos (eval mode).

    x:           (B, L, c_in) float32
    conv_weight: (d_model, c_in, 3) float32 (PyTorch Conv1d weight layout)
    x_mark:      unused (module ignores it)
    returns      (B, L, d_model) float32
    """
    del x_mark
    B, L, c_in = x.shape
    d_model, _, K = conv_weight.shape
    assert K == 3

    # --- circular pad + im2col unfold (index plumbing kept in the wrapper) ---
    x_circ = jnp.concatenate([x[:, -1:, :], x, x[:, :1, :]], axis=1)           # (B, L+2, c_in)
    x_unf = jnp.concatenate([x_circ[:, k:k + L, :] for k in range(K)], axis=-1)  # (B, L, 3*c_in)
    # w_flat[k*c_in + c, d] == conv_weight[d, c, k]
    w_flat = jnp.transpose(conv_weight, (2, 1, 0)).reshape(K * c_in, d_model)

    pe = _build_pos_table(L, d_model)                                          # (L, d_model)

    # --- tile sizes: lane-dense d tiles, sublane-aligned seq tiles ---
    TD = d_model if d_model <= 512 else _pick_tile(d_model, (512, 256, 128))
    TL = L if L <= 512 else _pick_tile(L, (512, 256, 128, 64, 32, 16, 8))
    KC = K * c_in

    grid = (B, L // TL, d_model // TD)

    out = pl.pallas_call(
        _embed_kernel,
        out_shape=jax.ShapeDtypeStruct((B, L, d_model), jnp.float32),
        grid_spec=pltpu.PrefetchScalarGridSpec(
            num_scalar_prefetch=0,
            grid=grid,
            in_specs=[
                pl.BlockSpec((None, TL, KC), lambda b, l, j: (b, l, 0)),   # x_unf
                pl.BlockSpec((KC, TD), lambda b, l, j: (0, j)),            # w_flat
                pl.BlockSpec((TL, TD), lambda b, l, j: (l, j)),            # pe
            ],
            out_specs=pl.BlockSpec((None, TL, TD), lambda b, l, j: (b, l, j)),
        ),
        compiler_params=pltpu.CompilerParams(
            dimension_semantics=("parallel", "parallel", "parallel"),
        ),
    )(x_unf, w_flat, pe)

    # TODO(synk): nn.Dropout(p=0.1) is identity at inference; training-mode dropout would
    # need pltpu.prng_seed / pltpu.prng_random_bits inside the kernel.
    return out


if __name__ == "__main__":
    # Small shapes consistent with the module's forward: x is (B, L, c_in) values.
    B, L, c_in, d_model = 2, 8, 4, 32

    key = jax.random.PRNGKey(0)
    kx, kw = jax.random.split(key)
    x = jax.random.normal(kx, (B, L, c_in), dtype=jnp.float32)

    # Kaiming-normal (fan_in) init for the Conv1d weight, deterministic.
    fan_in = c_in * 3
    std = math.sqrt(2.0) / math.sqrt(fan_in)
    conv_weight = std * jax.random.normal(kw, (d_model, c_in, 3), dtype=jnp.float32)

    out = data_embedding_onlypos(x, conv_weight)
    out = jax.block_until_ready(out)

    # Reference: circular conv via rolls + positional table (independent plain-JAX path).
    pe = _build_pos_table(L, d_model)
    ref = (
        jnp.einsum("blc,dc->bld", jnp.roll(x, 1, axis=1), conv_weight[:, :, 0])
        + jnp.einsum("blc,dc->bld", x, conv_weight[:, :, 1])
        + jnp.einsum("blc,dc->bld", jnp.roll(x, -1, axis=1), conv_weight[:, :, 2])
        + pe[None]
    )

    assert out.shape == (B, L, d_model)
    assert out.dtype == jnp.float32
    assert bool(jnp.allclose(out, ref, atol=1e-5, rtol=1e-5))

    print("KERNEL_OK")
</pallas_src>

<mosaic_0001>
module attributes {stable_mosaic.version = 11 : i64} {
  func.func @_embed_kernel(%arg0: i32, %arg1: i32, %arg2: i32, %arg3: memref<1x8x12xf32, #tpu.memory_space<vmem>>, %arg4: memref<12x32xf32, #tpu.memory_space<vmem>>, %arg5: memref<8x32xf32, #tpu.memory_space<vmem>>, %arg6: memref<1x8x32xf32, #tpu.memory_space<vmem>>) attributes {dimension_semantics = [#tpu.dimension_semantics<parallel>, #tpu.dimension_semantics<parallel>, #tpu.dimension_semantics<parallel>], iteration_bounds = array<i64: 2, 1, 1>, scalar_prefetch = 0 : i64, scratch_operands = 0 : i64, tpu.core_type = #tpu.core_type<tc>, window_params = [{transform_indices = @transform_0, window_bounds = array<i64: 1, 8, 12>}, {transform_indices = @transform_1, window_bounds = array<i64: 12, 32>}, {transform_indices = @transform_2, window_bounds = array<i64: 8, 32>}, {transform_indices = @transform_3, window_bounds = array<i64: 1, 8, 32>}]} {
    %c0 = arith.constant 0 : index
    %c0_0 = arith.constant 0 : index
    %c0_1 = arith.constant 0 : index
    %0 = vector.load %arg3[%c0, %c0_0, %c0_1] : memref<1x8x12xf32, #tpu.memory_space<vmem>>, vector<1x8x12xf32>
    %1 = vector.shape_cast %0 : vector<1x8x12xf32> to vector<8x12xf32>
    %c0_2 = arith.constant 0 : index
    %c0_3 = arith.constant 0 : index
    %2 = vector.load %arg4[%c0_2, %c0_3] : memref<12x32xf32, #tpu.memory_space<vmem>>, vector<12x32xf32>
    %cst = arith.constant dense<0.000000e+00> : vector<8x32xf32>
    %3 = tpu.matmul %1, %2, %cst {dimension_numbers = #tpu.dot_dimension_numbers<[1], [0], [0], [1], [0, 0, 1, 1], [], []>} : vector<8x12xf32>, vector<12x32xf32>, vector<8x32xf32> -> vector<8x32xf32>
    %c0_4 = arith.constant 0 : index
    %c0_5 = arith.constant 0 : index
    %4 = vector.load %arg5[%c0_4, %c0_5] : memref<8x32xf32, #tpu.memory_space<vmem>>, vector<8x32xf32>
    %5 = arith.addf %3, %4 : vector<8x32xf32>
    %c0_6 = arith.constant 0 : index
    %c0_7 = arith.constant 0 : index
    %c0_8 = arith.constant 0 : index
    %6 = vector.load %arg6[%c0_6, %c0_7, %c0_8] : memref<1x8x32xf32, #tpu.memory_space<vmem>>, vector<1x8x32xf32>
    %7 = vector.shape_cast %6 : vector<1x8x32xf32> to vector<8x32xf32>
    %8 = vector.shape_cast %5 : vector<8x32xf32> to vector<1x8x32xf32>
    tpu.vector_store %arg6[%c0_6, %c0_7, %c0_8], %8 {strides = array<i32>} : memref<1x8x32xf32, #tpu.memory_space<vmem>>, vector<1x8x32xf32>,
    return
  }
  func.func @transform_0(%arg0: i32, %arg1: i32, %arg2: i32) -> (i32, i32, i32) {
    %c0_i32 = arith.constant 0 : i32
    %c0_i32_0 = arith.constant 0 : i32
    return %arg0, %arg1, %c0_i32 : i32, i32, i32
  }
  func.func @transform_1(%arg0: i32, %arg1: i32, %arg2: i32) -> (i32, i32) {
    %c0_i32 = arith.constant 0 : i32
    %c0_i32_0 = arith.constant 0 : i32
    return %c0_i32, %arg2 : i32, i32
  }
  func.func @transform_2(%arg0: i32, %arg1: i32, %arg2: i32) -> (i32, i32) {
    %c0_i32 = arith.constant 0 : i32
    return %arg1, %arg2 : i32, i32
  }
  func.func @transform_3(%arg0: i32, %arg1: i32, %arg2: i32) -> (i32, i32, i32) {
    %c0_i32 = arith.constant 0 : i32
    return %arg0, %arg1, %arg2 : i32, i32, i32
  }
}

</mosaic_0001>

<bundles_post_ra>
// kernel: tpu_custom_call.1
= control target key start
LH: loop header
LB: loop body
LE: loop exit
PB: predicated region body
PF: predicated region fallthrough
CT: control target
= control target key end

     0   :  { %8 = vsyncpa [#allocation3], 0  ;;  %s954_s0 = inlined_call_operand.hbm [shape: f32[2,8,12], index: 0, kind: input, shape index: {}]   ;;  %s955_s1 = inlined_call_operand.hbm [shape: f32[12,32], index: 1, kind: input, shape index: {}]   ;;  %s956_s2 = inlined_call_operand.hbm [shape: f32[8,32], index: 2, kind: input, shape index: {}]   ;;  %s957_s3 = inlined_call_operand.hbm [shape: f32[2,8,32], index: 3, kind: output, shape index: {}]  }
   0x1   :  { %10 = vsyncpa [#allocation3 + $0x1], 0 }
   0x2   :  { %11 = vsyncpa [#allocation6], 0 }
   0x3   :  { %12 = vsyncpa [#allocation4], 0 }
   0x4   :  { %14 = vsyncpa [#allocation4 + $0x1], 0  ;;  %s774_s12 = smov 0   ;;  %s776_s13 = smov 0  }
   0x5   :  { %s778_s14 = smov 0   ;;  %s780_s15 = smov 0  }
   0x6   :  { %s782_s16 = smov 0   ;;  %s784_s17 = smov 0  }
   0x7 LB: > { %s464_s18 = sadd.s32 4294967295, %s744_s17   ;;  %s465_s19 = sadd.s32 4294967294, %s744_s17   ;;  %s744_s17 = sphi %s784_s17, %s20_s17   ;;  %s740_s16 = sphi %s782_s16, %s977_s16   ;;  %s736_s15 = sphi %s780_s15, %s976_s15   ;;  %s732_s14 = sphi %s778_s14, %s975_s14   ;;  %s728_s13 = sphi %s776_s13, %s974_s13   ;;  %s724_s12 = sphi %s774_s12, %s973_s12  }
   0x8   : > { %p61_p0 = scmp.ne.s32.totalorder %s728_s13, %s724_s12  ;;  %p808_p1 = scmp.eq.s32.totalorder %s464_s18, 0 }
   0x9   : > { %p812_p2 = scmp.eq.s32.totalorder %s464_s18, 1  ;;  %p149_p3 = scmp.eq.s32.totalorder %s465_s19, 1 }
   0xa   : > { %s961_s20 = scalar_select %p808_p1, 1, 0 }
   0xb   : > { %p818_p4 = por %p808_p1, %p61_p0  ;;  %p466_p5 = scmp.ge.s32.totalorder %s744_s17, 1 }
   0xc   : > { %p823_p6 = por %p149_p3, %p61_p0  ;;  %p156_p7 = scmp.lt.s32.totalorder %s744_s17, 3 }
   0xd   : > { %s963_s22 = scalar_select %p818_p4, 1, 0 }
   0xe   : > { %s964_s23 = scalar_select %p823_p6, 1, 0 }
   0xf   : > { %p828_p8 = pnand %p466_p5, %p156_p7  ;;  %s746_s25 = smov [#allocation5]  }
  0x10   : > { %s170_s26 = sshll.u32 %s746_s25, 4  ;;  %s747_s28 = smov [#allocation7]   ;;  %s171_s26 = int_to_ptr.vmem [resolvable:$true] %s170_s26 }
  0x11   : > { %p505_p9 = pneg %p828_p8  ;;  %s187_s29 = sshll.u32 %s747_s28, 4  ;;  %s188_s29 = int_to_ptr.vmem [resolvable:$true] %s187_s29 }
  0x12   : > { %s591_s30 = scalar_lea.vmem %s171_s26, 256  ;;  %p599_p5 = scmp.lt.s32.totalorder %s171_s26, %s171_s26 }
  0x13   : > { %p837_p11 = pnand %p505_p9, %p808_p1  ;;  %p592_p13 = scmp.ne.s32.totalorder %s171_s26, %s591_s30 }
  0x14   : > { %p600_p7 = scmp.lt.s32.totalorder %s591_s30, %s591_s30 }
  0x15   : > { %p582_p12 = pneg %p837_p11 }
  0x16   : > { %p601_p10 = por %p600_p7, %p599_p5 }
  0x17   : > { %p594_p0 = pnand %p592_p13, %p582_p12 }
  0x19   : > { %p595_p3 = pneg %p594_p0 }
  0x1b   : > { %p602_p9 = pnand %p601_p10, %p595_p3 }
  0x1d   : > { %605 = shalt.err (!%p602_p9)
}
  0x1e   : > { %s748_s4 = smov 128   ;;  %s749_s5 = smov 8  }
  0x1f   : > { %508 = dma.hbm_to_vmem [thread:$0]  (!%p837_p11), %s955_s1, 256, %s171_s26, [#allocation6], %s748_s4, %s748_s4, %s749_s5  }
  0x20   : > { %s617_s8 = scalar_lea.vmem %s188_s29, 128  ;;  %p625_p1 = scmp.lt.s32.totalorder %s188_s29, %s188_s29 }
  0x21   : > { %p618_p6 = scmp.ne.s32.totalorder %s188_s29, %s617_s8  ;;  %p626_p4 = scmp.lt.s32.totalorder %s617_s8, %s617_s8 }
  0x23   : > { %p620_p13 = pnand %p618_p6, %p582_p12  ;;  %p627_p5 = por %p626_p4, %p625_p1 }
  0x25   : > { %p621_p0 = pneg %p620_p13 }
  0x27   : > { %p628_p10 = pnand %p627_p5, %p621_p0 }
  0x29   : > { %631 = shalt.err (!%p628_p10)
}
  0x2a   : > { %511 = dma.hbm_to_vmem [thread:$0]  (!%p837_p11), %s956_s2, 128, %s188_s29, [#allocation6]  }
  0x2b   : > { %s39_s11 = sadd.s32 1, %s740_s16  ;;  %s48_s18 = sadd.s32 1, %s732_s14 }
  0x2c   : > { %p41_p1 = scmp.ge.s32.totalorder %s39_s11, 2  ;;  %p55_p4 = scmp.ne.s32.totalorder %s732_s14, %s728_s13 }
  0x2d   : > { %p56_p6 = scmp.eq.s32.totalorder %s744_s17, 0  ;;  %p522_p12 = scmp.lt.s32.totalorder %s744_s17, 2 }
  0x2e   : > { %s979_s11 = smov (%p41_p1, %s39_s11), 0  ;;  %p869_p7 = por %p812_p2, %p55_p4 }
  0x2f   : > { %p57_p3 = por %p56_p6, %p55_p4  ;;  %s43_s25 = ssub.s32 %s740_s16, %s979_s11 }
  0x30   : > { %s198_s26 = sand.u32 1, %s732_s14   ;;  %p46_p9 = scmp.eq.s32.totalorder %s43_s25, 0 }
  0x31   : > { %s470_s27 = sshll.u32 %s198_s26, 3  ;;  %s471_s28 = sshll.u32 %s740_s16, 7 }
  0x32   : > { %s878_s29 = scalar_select %p46_p9, %s732_s14, %s48_s18  }
  0x33   : > { %s208_s5 = scalar_lea.hbm %s954_s0, %s471_s28  ;;  %s202_s6 = scalar_lea.vmem [#allocation2], %s470_s27 }
  0x34   : > { %s210_s7 = sshll.u32 %s202_s6, 4  ;;  %p885_p11 = pnand %p522_p12, %p57_p3  ;;  %s211_s7 = int_to_ptr.vmem [resolvable:$true] %s210_s7 }
  0x35   : > { %s199_s8 = scalar_lea.sflag [#allocation3], %s198_s26  ;;  %s645_s9 = scalar_lea.vmem %s211_s7, 128 }
  0x36   : > { %p634_p2 = pneg %p885_p11  ;;  %p646_p13 = scmp.ne.s32.totalorder %s211_s7, %s645_s9 }
  0x37   : > { %s750_s10 = smov [#allocation2]  }
  0x38   : > { %p648_p0 = pnand %p646_p13, %p634_p2  ;;  %s650_s18 = sshll.u32 %s750_s10, 4  ;;  %s651_s18 = int_to_ptr.vmem [resolvable:$false] %s650_s18 }
  0x39   : > { %s652_s25 = scalar_lea.vmem %s651_s18, 256  ;;  %p653_p10 = scmp.lt.s32.totalorder %s211_s7, %s651_s18 }
  0x3a   : > { %p649_p5 = pneg %p648_p0  ;;  %p654_p1 = scmp.lt.s32.totalorder %s652_s25, %s645_s9 }
  0x3c   : > { %p655_p4 = por %p654_p1, %p653_p10 }
  0x3e   : > { %p656_p6 = pnand %p655_p4, %p649_p5 }
  0x40   : > { %659 = shalt.err (!%p656_p6)
}
  0x41   : > { %515 = dma.hbm_to_vmem [thread:$0]  (!%p885_p11), %s208_s5, 128, %s211_s7, %s199_s8  }
  0x42   : > { %219 = sbr.rel (%p828_p8) target bundleno = 288 (0x120), region = 32  ;;  %s896_s26 = sand.u32 (!%p828_p8), 1, %s728_s13  }
  0x43   : > { %s473_s27 = sshll.u32 (!%p828_p8), %s896_s26, 3  ;;  %s222_s28 = scalar_lea.sflag (!%p828_p8), [#allocation3], %s896_s26 }
  0x44   : > { %s225_s30 = scalar_lea.vmem (!%p828_p8), [#allocation2], %s473_s27  ;;  %p969_p12 = scmp.ne.s32.totalorder (!%p828_p8), %s963_s22, 0 }
  0x47   : > { %711 = dma.done.wait (%p969_p12), %s222_s28, 128  }
  0x48   : > { %713 = vsyncadd (%p969_p12), %s222_s28, 4294967168  ;;  %p970_p3 = scmp.ne.s32.totalorder %s961_s20, 0 }
  0x4a   : > { %715 = dma.done.wait (%p970_p3), [#allocation6], 384  }
  0x4b   : > { %717 = vsyncadd (%p970_p3), [#allocation6], 4294966912  ;;  %v751_v0 = vmov 0.0   ;;  %vm752_vm0 = vmmov 0   ;;  %vm264_vm1 = vcmask 1043456   ;;  %v257_v2 = vld [vmem:[#allocation5] sm:$0xff] }
  0x4c   : > { %486 = vmatprep.subr.mxu0 %v751_v0  ;;  %490 = vmatprep.mubr.msk.f32.mxu0 %vm752_vm0, %v751_v0  ;;  %v258_v1 = vld [vmem:[#allocation5 + $0x8] sm:$0xf]  ;;  %v256_v3 = vld [vmem:[%s225_s30] sm:$0xff]  ;;  %vm260_vm2 = vcmask 97280   ;;  %s480_s22 = sshll.u32 %s736_s15, 7  ;;  %s255_s20 = scalar_lea.vmem [#allocation8], %s473_s27 }
  0x4d   : > { %487 = vmatpush3.msk.msra.mxu0 %vm264_vm1, %v258_v1  ;;  %v259_v4 = vld [vmem:[#allocation7] sm:$0xff]  ;;  %s356_s24 = sshll.u32 %s255_s20, 4  ;;  %vm338_vm3 = vcmask 261120   ;;  %s912_s6 = scalar_lea.hbm %s957_s3, %s480_s22  ;;  %s357_s24 = int_to_ptr.vmem [resolvable:$true] %s356_s24 }
  0x4e   : > { %488 = vmatprep.subr.mxu0 %v751_v0  ;;  %s341_s7 = scalar_lea.sflag [#allocation4], %s896_s26  ;;  %s660_s21 = scalar_lea.vmem %s357_s24, 128 }
  0x4f   : > { %489 = vmatpush3.msra.mxu0 %v257_v2  ;;  %p661_p8 = scmp.ne.s32.totalorder %s357_s24, %s660_s21  ;;  %s753_s15 = smov [#allocation8]  }
  0x50   : > { %491 = vmatmul.mubr.msk.f32.vlgmr.msra.gmra.mxu0 %vm260_vm2, %v256_v3  ;;  %s664_s8 = sshll.u32 %s753_s15, 4  ;;  %s665_s8 = int_to_ptr.vmem [resolvable:$false] %s664_s8 }
  0x51   : > { %p662_p9 = pnand %p661_p8, %p869_p7  ;;  %s666_s9 = scalar_lea.vmem %s665_s8, 256 }
  0x52   : > { %p667_p2 = scmp.lt.s32.totalorder %s357_s24, %s665_s8  ;;  %p668_p13 = scmp.lt.s32.totalorder %s666_s9, %s660_s21 }
  0x53   : > { %p663_p11 = pneg %p662_p9 }
  0x54   : > { %p669_p0 = por %p668_p13, %p667_p2 }
  0x56   : > { %p670_p5 = pnand %p669_p0, %p663_p11 }
 0x110   : > { %v334_v5 = vpop.f32.mrf.mxu0 }
 0x111   : > { %v335_v6 = vadd.f32 %v334_v5, %v259_v4 }
 0x112   : > { %v492_v7 = vpop.f32.mrf.mxu0 }
 0x113   : > { %339 = vst.msk [vmem:[%s255_s20] sm:$0xff] %vm338_vm3, %v335_v6 }
 0x114   : > { %673 = shalt.err (!%p670_p5)
}
 0x115   : > { %s674_s10 = scalar_lea.hbm %s912_s6, 128  ;;  %s678_s26 = scalar_lea.hbm %s957_s3, 256 }
 0x116   : > { %p675_p10 = scmp.ne.s32.totalorder %s912_s6, %s674_s10  ;;  %p679_p6 = scmp.lt.s32.totalorder %s912_s6, %s957_s3 }
 0x117   : > { %p680_p12 = scmp.lt.s32.totalorder %s678_s26, %s674_s10 }
 0x118   : > { %p676_p1 = pnand %p675_p10, %p869_p7 }
 0x119   : > { %p681_p3 = por %p680_p12, %p679_p6 }
 0x11a   : > { %p677_p4 = pneg %p676_p1 }
 0x11c   : > { %p682_p8 = pnand %p681_p3, %p677_p4 }
 0x11e   : > { %685 = shalt.err (!%p682_p8)
}
 0x11f   : > { %503 = dma.vmem_to_hbm [thread:$0]  (%p869_p7), %s357_s24, 128, %s912_s6, %s341_s7  }
 0x120 PF: > { %s368_s30 = sand.u32 1, %s724_s12   ;;  %p971_p9 = scmp.ne.s32.totalorder %s964_s23, 0 }
 0x121   : > { %p972_p11 = scmp.ge.s32.totalorder %s744_s17, 2  ;;  %s369_s22 = scalar_lea.sflag [#allocation4], %s368_s30 }
 0x123   : > { %p517_p2 = pnand %p972_p11, %p971_p9 }
 0x125   : > { %p518_p13 = pneg %p517_p2 }
 0x127   : > { %719 = dma.done.wait (%p518_p13), %s369_s22, 128  }
 0x128   : > { %721 = vsyncadd (%p518_p13), %s369_s22, 4294967168  ;;  %s20_s17 = sadd.s32 1, %s744_s17   ;;  %s973_s12 = smov %s728_s13 }
 0x129   : > { %p17_p0 = scmp.ge.s32.totalorder %s20_s17, 4   ;;  %s974_s13 = smov %s732_s14 }
 0x12a   : > { %s975_s14 = smov %s878_s29  ;;  %s976_s15 = smov %s740_s16 }
 0x12b   : > { %s977_s16 = smov %s979_s11  ;;  %19 = sbr.rel (!%p17_p0) target bundleno = 7 (0x7), region = 87 }
 0x130   :  { %374 = vsyncpa [#allocation3], 1 }
 0x131   :  { %376 = vsyncpa [#allocation3 + $0x1], 1 }
 0x132   :  { %377 = vsyncpa [#allocation6], 1 }
 0x133   :  { %378 = vsyncpa [#allocation4], 1 }
 0x134   :  { %380 = vsyncpa [#allocation4 + $0x1], 1 }

</bundles_post_ra>
